<compile_context>
chip_gen: v7x
topology: tpu7x:2x2x1
jax: 0.10.0
libtpu: 0.0.40
codegen_flags: <defaults>
</compile_context>

<pallas_src>
import functools

import jax
import jax.numpy as jnp
from jax.experimental import pallas as pl
from jax.experimental.pallas import tpu as pltpu

_NEG_LARGE = -1e30


# --------------------------------------------------------------------------- #
# Fused GraphConv layer:  o = epilogue(A_hat @ (X @ W) + b)
# --------------------------------------------------------------------------- #
def _gcn_layer_kernel(a_ref, x_ref, w_ref, bias_ref, o_ref, acc_ref, *,
                      tk, epilogue, valid_cols):
    """grid = (row_tiles, k_tiles).

    A is streamed as [tm, tk] tiles (double-buffered); X, W, bias have constant
    index maps -> DMA'd once per core and kept resident in VMEM.  The X@W
    contraction tile is recomputed per row tile (costs Fpad/tm of the A-matmul
    FLOPs) instead of paying an HBM roundtrip for the [Npad, Hout] intermediate.
    """
    k = pl.program_id(1)

    @pl.when(k == 0)
    def _():
        acc_ref[...] = jnp.zeros_like(acc_ref)

    # Feature transform for this contraction tile (rows k*tk : k*tk+tk of X).
    row0 = pl.multiple_of(k * tk, tk)
    xw = jnp.dot(x_ref[pl.ds(row0, tk), :], w_ref[...],
                 preferred_element_type=jnp.float32)            # [tk, Hout] f32
    acc_ref[...] += jnp.dot(a_ref[...], xw.astype(a_ref.dtype),
                            preferred_element_type=jnp.float32)  # [tm, Hout] f32

    @pl.when(k == pl.num_programs(1) - 1)
    def _():
        z = acc_ref[...] + bias_ref[...]
        if epilogue == "relu":
            z = jnp.maximum(z, 0.0)
        elif epilogue == "log_softmax":
            cols = jax.lax.broadcasted_iota(jnp.int32, z.shape, 1)
            z = jnp.where(cols < valid_cols, z, _NEG_LARGE)  # mask padded classes
            m = jnp.max(z, axis=1, keepdims=True)
            s = z - m
            lse = jnp.log(jnp.sum(jnp.exp(s), axis=1, keepdims=True))
            z = s - lse
        o_ref[...] = z.astype(o_ref.dtype)


def _gcn_layer(a_p, x_p, w_p, bias_p, *, epilogue, valid_cols=None,
               out_dtype=jnp.float32, tm, tk,
               vmem_limit=32 * 1024 * 1024):
    npad, npad2 = a_p.shape
    npad3, fpad = x_p.shape
    fpad2, hout = w_p.shape
    assert npad == npad2 == npad3 and fpad == fpad2
    assert npad % tm == 0 and npad % tk == 0
    assert fpad % 128 == 0 and hout % 128 == 0

    # Resident operands must stay well under the per-core VMEM budget (v7x: 64 MiB).
    itemsize = jnp.dtype(a_p.dtype).itemsize
    resident_bytes = (npad * fpad + fpad * hout + hout) * itemsize
    assert resident_bytes <= 16 * 1024 * 1024, (
        "resident X/W too large for VMEM")
    # TODO(synk): for very large graphs, stream X per k-tile instead of keeping
    # the full [Npad, Fpad] matrix resident.

    kernel = functools.partial(
        _gcn_layer_kernel, tk=tk, epilogue=epilogue,
        valid_cols=hout if valid_cols is None else valid_cols)

    return pl.pallas_call(
        kernel,
        out_shape=jax.ShapeDtypeStruct((npad, hout), out_dtype),
        grid_spec=pltpu.PrefetchScalarGridSpec(
            num_scalar_prefetch=0,
            grid=(npad // tm, npad // tk),
            in_specs=[
                pl.BlockSpec((tm, tk), lambda i, kk: (i, kk)),     # A tile (streamed)
                pl.BlockSpec((npad, fpad), lambda i, kk: (0, 0)),  # X resident (one DMA)
                pl.BlockSpec((fpad, hout), lambda i, kk: (0, 0)),  # W resident (one DMA)
                pl.BlockSpec((1, hout), lambda i, kk: (0, 0)),     # bias resident
            ],
            out_specs=pl.BlockSpec((tm, hout), lambda i, kk: (i, 0)),
            scratch_shapes=[pltpu.VMEM((tm, hout), jnp.float32)],
        ),
        compiler_params=pltpu.CompilerParams(
            dimension_semantics=("parallel", "arbitrary"),
            vmem_limit_bytes=vmem_limit,
        ),
    )(a_p, x_p, w_p, bias_p)


# --------------------------------------------------------------------------- #
# Tiling / padding helpers
# --------------------------------------------------------------------------- #
def _round_up(x, m):
    return ((x + m - 1) // m) * m


def _pad2d(x, rows, cols):
    r, c = x.shape
    return jnp.pad(x, ((0, rows - r), (0, cols - c)))


def _pick_row_tile(npad):
    # Keep >= 2 row tiles so the 'parallel' row axis feeds both v7x TensorCores;
    # use 256-wide tiles when the graph is big enough to fill v6e/v7x's MXU.
    if npad >= 512:
        return 256
    if npad >= 256:
        return 128
    return npad


def _pick_k_tile(npad):
    # 256-wide contraction tiles fill the 2x256^2 MXU (v6e/v7x); v5e's 4x128^2
    # MXU maps natively onto either choice.
    return 256 if npad % 256 == 0 else 128


# --------------------------------------------------------------------------- #
# GCN forward
# --------------------------------------------------------------------------- #
def prepare_gcn_params(a_hat, w1, b1, w2, b2, *, mxu_dtype=jnp.bfloat16):
    """Pad + cast all static operands ONCE, outside the per-forward path."""
    n = a_hat.shape[0]
    in_size, hid_size = w1.shape
    out_size = w2.shape[1]
    npad = _round_up(n, 128)
    fpad = _round_up(in_size, 128)
    hpad = _round_up(hid_size, 128)
    cpad = _round_up(out_size, 128)
    return dict(
        n=n, in_size=in_size, hid_size=hid_size, out_size=out_size,
        npad=npad, fpad=fpad, hpad=hpad, cpad=cpad,
        a=_pad2d(a_hat, npad, npad).astype(mxu_dtype),
        w1=_pad2d(w1, fpad, hpad).astype(mxu_dtype),
        w2=_pad2d(w2, hpad, cpad).astype(mxu_dtype),
        b1=_pad2d(b1.reshape(1, -1), 1, hpad).astype(jnp.float32),
        b2=_pad2d(b2.reshape(1, -1), 1, cpad).astype(jnp.float32),
    )


def gcn_forward(params, x):
    p = params
    npad, fpad = p["npad"], p["fpad"]
    tm = _pick_row_tile(npad)
    tk = _pick_k_tile(npad)

    x_p = _pad2d(x, npad, fpad).astype(p["a"].dtype)

    # ---- layer 0 (one fused kernel): h = relu(A_hat @ (X @ W1) + b1) ----
    h = _gcn_layer(p["a"], x_p, p["w1"], p["b1"], epilogue="relu",
                   out_dtype=p["a"].dtype, tm=tm, tk=tk)          # [Npad, Hpad]

    # ---- dropout(0.5): eval-mode identity ----
    # TODO(synk): training-mode dropout would use pltpu.prng_seed + prng_random_bits.

    # ---- layer 1 (one fused kernel): y = log_softmax(A_hat @ (h @ W2) + b2) ----
    y = _gcn_layer(p["a"], h, p["w2"], p["b2"], epilogue="log_softmax",
                   valid_cols=p["out_size"], out_dtype=jnp.float32,
                   tm=tm, tk=tk)                                  # [Npad, Cpad]

    return y[:p["n"], :p["out_size"]]


# --------------------------------------------------------------------------- #
# Reference / test harness
# --------------------------------------------------------------------------- #
def build_normalized_adjacency(key, n):
    """Random undirected graph + self loops, symmetric normalization."""
    raw = jax.random.uniform(key, (n, n))
    adj = (raw + raw.T) * 0.5
    adj = (adj > 0.6).astype(jnp.float32)
    adj = jnp.minimum(adj + jnp.eye(n, dtype=jnp.float32), 1.0)
    deg = jnp.sum(adj, axis=1)
    d_inv_sqrt = 1.0 / jnp.sqrt(deg)
    return adj * d_inv_sqrt[:, None] * d_inv_sqrt[None, :]


def reference_forward_f32(a_hat, x, w1, b1, w2, b2):
    """Pure f32 reference (true module precision, not the bf16 MXU recipe)."""
    h = jnp.maximum(a_hat @ (x @ w1) + b1, 0.0)
    z = a_hat @ (h @ w2) + b2
    return jax.nn.log_softmax(z, axis=1)


if __name__ == "__main__":
    # Small shapes consistent with the module; N=256 so the row tiling is real.
    N = 256
    IN_SIZE = 16
    HID_SIZE = 32
    OUT_SIZE = 8

    key = jax.random.PRNGKey(0)
    k_adj, k_x, k_w1, k_w2 = jax.random.split(key, 4)

    a_hat = build_normalized_adjacency(k_adj, N)                       # [N, N]
    x = jax.random.normal(k_x, (N, IN_SIZE), dtype=jnp.float32)        # [N, F_in]

    # Deterministic Glorot-uniform-ish init (shapes from GraphConv __init__).
    lim1 = (6.0 / (IN_SIZE + HID_SIZE)) ** 0.5
    w1 = jax.random.uniform(k_w1, (IN_SIZE, HID_SIZE), jnp.float32, -lim1, lim1)
    b1 = jnp.zeros((1, HID_SIZE), jnp.float32)
    lim2 = (6.0 / (HID_SIZE + OUT_SIZE)) ** 0.5
    w2 = jax.random.uniform(k_w2, (HID_SIZE, OUT_SIZE), jnp.float32, -lim2, lim2)
    b2 = jnp.zeros((1, OUT_SIZE), jnp.float32)

    # Pad + cast static operands once, outside the per-forward path.
    params = prepare_gcn_params(a_hat, w1, b1, w2, b2)
    fwd = jax.jit(lambda feats: gcn_forward(params, feats))

    out = jax.block_until_ready(fwd(x))

    assert out.shape == (N, OUT_SIZE)

    # Sanity: log_softmax rows must sum (in prob space) to ~1.
    row_prob_sums = jnp.sum(jnp.exp(out), axis=1)
    assert bool(jnp.all(jnp.abs(row_prob_sums - 1.0) < 1e-3))

    # Compare against a pure-f32 reference (bounds the bf16 MXU-path error).
    ref = reference_forward_f32(a_hat, x, w1, b1, w2, b2)
    max_err = float(jnp.max(jnp.abs(out - ref)))
    assert max_err < 5e-2, f"max abs error vs f32 reference: {max_err}"

    print("KERNEL_OK")
</pallas_src>

<mosaic_0001>
module attributes {stable_mosaic.version = 11 : i64} {
  func.func @_gcn_layer_kernel(%arg0: i32, %arg1: i32, %arg2: memref<128x256xbf16, #tpu.memory_space<vmem>>, %arg3: memref<256x128xbf16, #tpu.memory_space<vmem>>, %arg4: memref<128x128xbf16, #tpu.memory_space<vmem>>, %arg5: memref<1x128xf32, #tpu.memory_space<vmem>>, %arg6: memref<128x128xbf16, #tpu.memory_space<vmem>>, %arg7: memref<128x128xf32, #tpu.memory_space<vmem>>) attributes {dimension_semantics = [#tpu.dimension_semantics<parallel>, #tpu.dimension_semantics<arbitrary>], iteration_bounds = array<i64: 2, 1>, scalar_prefetch = 0 : i64, scratch_operands = 1 : i64, tpu.core_type = #tpu.core_type<tc>, window_params = [{transform_indices = @transform_0, window_bounds = array<i64: 128, 256>}, {pipeline_mode = #tpu.pipeline_mode<synchronous>, transform_indices = @transform_1, window_bounds = array<i64: 256, 128>}, {pipeline_mode = #tpu.pipeline_mode<synchronous>, transform_indices = @transform_2, window_bounds = array<i64: 128, 128>}, {pipeline_mode = #tpu.pipeline_mode<synchronous>, transform_indices = @transform_3, window_bounds = array<i64: 1, 128>}, {transform_indices = @transform_4, window_bounds = array<i64: 128, 128>}]} {
    %c0_i32 = arith.constant 0 : i32
    %0 = arith.cmpi eq, %arg1, %c0_i32 : i32
    %1 = arith.extui %0 : i1 to i32
    %c0_i32_0 = arith.constant 0 : i32
    %2 = arith.cmpi ne, %1, %c0_i32_0 : i32
    scf.if %2 {
      %cst_12 = arith.constant 0.000000e+00 : f32
      %18 = vector.broadcast %cst_12 : f32 to vector<128x128xf32>
      %c0_13 = arith.constant 0 : index
      %c0_14 = arith.constant 0 : index
      %19 = vector.load %arg7[%c0_13, %c0_14] : memref<128x128xf32, #tpu.memory_space<vmem>>, vector<128x128xf32>
      tpu.vector_store %arg7[%c0_13, %c0_14], %18 {strides = array<i32>} : memref<128x128xf32, #tpu.memory_space<vmem>>, vector<128x128xf32>,
    } else {
    }
    %c256_i32 = arith.constant 256 : i32
    %3 = arith.muli %arg1, %c256_i32 : i32
    %4 = tpu.assume_multiple %3, 256 : i32
    %5 = arith.index_cast %4 : i32 to index
    %c0 = arith.constant 0 : index
    %6 = vector.load %arg3[%5, %c0] : memref<256x128xbf16, #tpu.memory_space<vmem>>, vector<256x128xbf16>
    %c0_1 = arith.constant 0 : index
    %c0_2 = arith.constant 0 : index
    %7 = vector.load %arg4[%c0_1, %c0_2] : memref<128x128xbf16, #tpu.memory_space<vmem>>, vector<128x128xbf16>
    %cst = arith.constant dense<0.000000e+00> : vector<256x128xf32>
    %8 = tpu.matmul %6, %7, %cst {dimension_numbers = #tpu.dot_dimension_numbers<[1], [0], [0], [1], [0, 0, 1, 1], [], []>} : vector<256x128xbf16>, vector<128x128xbf16>, vector<256x128xf32> -> vector<256x128xf32>
    %c0_3 = arith.constant 0 : index
    %c0_4 = arith.constant 0 : index
    %9 = vector.load %arg7[%c0_3, %c0_4] : memref<128x128xf32, #tpu.memory_space<vmem>>, vector<128x128xf32>
    %c0_5 = arith.constant 0 : index
    %c0_6 = arith.constant 0 : index
    %10 = vector.load %arg2[%c0_5, %c0_6] : memref<128x256xbf16, #tpu.memory_space<vmem>>, vector<128x256xbf16>
    %11 = arith.truncf %8 : vector<256x128xf32> to vector<256x128xbf16>
    %cst_7 = arith.constant dense<0.000000e+00> : vector<128x128xf32>
    %12 = tpu.matmul %10, %11, %cst_7 {dimension_numbers = #tpu.dot_dimension_numbers<[1], [0], [0], [1], [0, 0, 1, 1], [], []>} : vector<128x256xbf16>, vector<256x128xbf16>, vector<128x128xf32> -> vector<128x128xf32>
    %13 = arith.addf %9, %12 : vector<128x128xf32>
    %c0_8 = arith.constant 0 : index
    %c0_9 = arith.constant 0 : index
    %14 = vector.load %arg7[%c0_8, %c0_9] : memref<128x128xf32, #tpu.memory_space<vmem>>, vector<128x128xf32>
    tpu.vector_store %arg7[%c0_8, %c0_9], %13 {strides = array<i32>} : memref<128x128xf32, #tpu.memory_space<vmem>>, vector<128x128xf32>,
    %c0_i32_10 = arith.constant 0 : i32
    %15 = arith.cmpi eq, %arg1, %c0_i32_10 : i32
    %16 = arith.extui %15 : i1 to i32
    %c0_i32_11 = arith.constant 0 : i32
    %17 = arith.cmpi ne, %16, %c0_i32_11 : i32
    scf.if %17 {
      %c0_12 = arith.constant 0 : index
      %c0_13 = arith.constant 0 : index
      %18 = vector.load %arg7[%c0_12, %c0_13] : memref<128x128xf32, #tpu.memory_space<vmem>>, vector<128x128xf32>
      %c0_14 = arith.constant 0 : index
      %c0_15 = arith.constant 0 : index
      %19 = vector.load %arg5[%c0_14, %c0_15] : memref<1x128xf32, #tpu.memory_space<vmem>>, vector<1x128xf32>
      %20 = vector.broadcast %19 : vector<1x128xf32> to vector<128x128xf32>
      %21 = arith.addf %18, %20 : vector<128x128xf32>
      %cst_16 = arith.constant 0.000000e+00 : f32
      %22 = vector.broadcast %cst_16 : f32 to vector<128x128xf32>
      %23 = arith.maximumf %21, %22 : vector<128x128xf32>
      %24 = arith.truncf %23 : vector<128x128xf32> to vector<128x128xbf16>
      %c0_17 = arith.constant 0 : index
      %c0_18 = arith.constant 0 : index
      %25 = vector.load %arg6[%c0_17, %c0_18] : memref<128x128xbf16, #tpu.memory_space<vmem>>, vector<128x128xbf16>
      tpu.vector_store %arg6[%c0_17, %c0_18], %24 {strides = array<i32>} : memref<128x128xbf16, #tpu.memory_space<vmem>>, vector<128x128xbf16>,
    } else {
    }
    return
  }
  func.func @transform_0(%arg0: i32, %arg1: i32) -> (i32, i32) {
    %c0_i32 = arith.constant 0 : i32
    return %arg0, %arg1 : i32, i32
  }
  func.func @transform_1(%arg0: i32, %arg1: i32) -> (i32, i32) {
    %c0_i32 = arith.constant 0 : i32
    %c0_i32_0 = arith.constant 0 : i32
    %c0_i32_1 = arith.constant 0 : i32
    return %c0_i32, %c0_i32_0 : i32, i32
  }
  func.func @transform_2(%arg0: i32, %arg1: i32) -> (i32, i32) {
    %c0_i32 = arith.constant 0 : i32
    %c0_i32_0 = arith.constant 0 : i32
    %c0_i32_1 = arith.constant 0 : i32
    return %c0_i32, %c0_i32_0 : i32, i32
  }
  func.func @transform_3(%arg0: i32, %arg1: i32) -> (i32, i32) {
    %c0_i32 = arith.constant 0 : i32
    %c0_i32_0 = arith.constant 0 : i32
    %c0_i32_1 = arith.constant 0 : i32
    return %c0_i32, %c0_i32_0 : i32, i32
  }
  func.func @transform_4(%arg0: i32, %arg1: i32) -> (i32, i32) {
    %c0_i32 = arith.constant 0 : i32
    %c0_i32_0 = arith.constant 0 : i32
    return %arg0, %c0_i32 : i32, i32
  }
}

module attributes {stable_mosaic.version = 11 : i64} {
  func.func @_gcn_layer_kernel(%arg0: i32, %arg1: i32, %arg2: memref<128x256xbf16, #tpu.memory_space<vmem>>, %arg3: memref<256x128xbf16, #tpu.memory_space<vmem>>, %arg4: memref<128x128xbf16, #tpu.memory_space<vmem>>, %arg5: memref<1x128xf32, #tpu.memory_space<vmem>>, %arg6: memref<128x128xf32, #tpu.memory_space<vmem>>, %arg7: memref<128x128xf32, #tpu.memory_space<vmem>>) attributes {dimension_semantics = [#tpu.dimension_semantics<parallel>, #tpu.dimension_semantics<arbitrary>], iteration_bounds = array<i64: 2, 1>, scalar_prefetch = 0 : i64, scratch_operands = 1 : i64, tpu.core_type = #tpu.core_type<tc>, window_params = [{transform_indices = @transform_0, window_bounds = array<i64: 128, 256>}, {pipeline_mode = #tpu.pipeline_mode<synchronous>, transform_indices = @transform_1, window_bounds = array<i64: 256, 128>}, {pipeline_mode = #tpu.pipeline_mode<synchronous>, transform_indices = @transform_2, window_bounds = array<i64: 128, 128>}, {pipeline_mode = #tpu.pipeline_mode<synchronous>, transform_indices = @transform_3, window_bounds = array<i64: 1, 128>}, {transform_indices = @transform_4, window_bounds = array<i64: 128, 128>}]} {
    %c0_i32 = arith.constant 0 : i32
    %0 = arith.cmpi eq, %arg1, %c0_i32 : i32
    %1 = arith.extui %0 : i1 to i32
    %c0_i32_0 = arith.constant 0 : i32
    %2 = arith.cmpi ne, %1, %c0_i32_0 : i32
    scf.if %2 {
      %cst_12 = arith.constant 0.000000e+00 : f32
      %18 = vector.broadcast %cst_12 : f32 to vector<128x128xf32>
      %c0_13 = arith.constant 0 : index
      %c0_14 = arith.constant 0 : index
      %19 = vector.load %arg7[%c0_13, %c0_14] : memref<128x128xf32, #tpu.memory_space<vmem>>, vector<128x128xf32>
      tpu.vector_store %arg7[%c0_13, %c0_14], %18 {strides = array<i32>} : memref<128x128xf32, #tpu.memory_space<vmem>>, vector<128x128xf32>,
    } else {
    }
    %c256_i32 = arith.constant 256 : i32
    %3 = arith.muli %arg1, %c256_i32 : i32
    %4 = tpu.assume_multiple %3, 256 : i32
    %5 = arith.index_cast %4 : i32 to index
    %c0 = arith.constant 0 : index
    %6 = vector.load %arg3[%5, %c0] : memref<256x128xbf16, #tpu.memory_space<vmem>>, vector<256x128xbf16>
    %c0_1 = arith.constant 0 : index
    %c0_2 = arith.constant 0 : index
    %7 = vector.load %arg4[%c0_1, %c0_2] : memref<128x128xbf16, #tpu.memory_space<vmem>>, vector<128x128xbf16>
    %cst = arith.constant dense<0.000000e+00> : vector<256x128xf32>
    %8 = tpu.matmul %6, %7, %cst {dimension_numbers = #tpu.dot_dimension_numbers<[1], [0], [0], [1], [0, 0, 1, 1], [], []>} : vector<256x128xbf16>, vector<128x128xbf16>, vector<256x128xf32> -> vector<256x128xf32>
    %c0_3 = arith.constant 0 : index
    %c0_4 = arith.constant 0 : index
    %9 = vector.load %arg7[%c0_3, %c0_4] : memref<128x128xf32, #tpu.memory_space<vmem>>, vector<128x128xf32>
    %c0_5 = arith.constant 0 : index
    %c0_6 = arith.constant 0 : index
    %10 = vector.load %arg2[%c0_5, %c0_6] : memref<128x256xbf16, #tpu.memory_space<vmem>>, vector<128x256xbf16>
    %11 = arith.truncf %8 : vector<256x128xf32> to vector<256x128xbf16>
    %cst_7 = arith.constant dense<0.000000e+00> : vector<128x128xf32>
    %12 = tpu.matmul %10, %11, %cst_7 {dimension_numbers = #tpu.dot_dimension_numbers<[1], [0], [0], [1], [0, 0, 1, 1], [], []>} : vector<128x256xbf16>, vector<256x128xbf16>, vector<128x128xf32> -> vector<128x128xf32>
    %13 = arith.addf %9, %12 : vector<128x128xf32>
    %c0_8 = arith.constant 0 : index
    %c0_9 = arith.constant 0 : index
    %14 = vector.load %arg7[%c0_8, %c0_9] : memref<128x128xf32, #tpu.memory_space<vmem>>, vector<128x128xf32>
    tpu.vector_store %arg7[%c0_8, %c0_9], %13 {strides = array<i32>} : memref<128x128xf32, #tpu.memory_space<vmem>>, vector<128x128xf32>,
    %c0_i32_10 = arith.constant 0 : i32
    %15 = arith.cmpi eq, %arg1, %c0_i32_10 : i32
    %16 = arith.extui %15 : i1 to i32
    %c0_i32_11 = arith.constant 0 : i32
    %17 = arith.cmpi ne, %16, %c0_i32_11 : i32
    scf.if %17 {
      %c0_12 = arith.constant 0 : index
      %c0_13 = arith.constant 0 : index
      %18 = vector.load %arg7[%c0_12, %c0_13] : memref<128x128xf32, #tpu.memory_space<vmem>>, vector<128x128xf32>
      %c0_14 = arith.constant 0 : index
      %c0_15 = arith.constant 0 : index
      %19 = vector.load %arg5[%c0_14, %c0_15] : memref<1x128xf32, #tpu.memory_space<vmem>>, vector<1x128xf32>
      %20 = vector.broadcast %19 : vector<1x128xf32> to vector<128x128xf32>
      %21 = arith.addf %18, %20 : vector<128x128xf32>
      %22 = tpu.iota {dimensions = array<i32: 1>} : vector<128x128xi32>
      %c8_i32 = arith.constant 8 : i32
      %23 = vector.broadcast %c8_i32 : i32 to vector<128x128xi32>
      %24 = arith.cmpi slt, %22, %23 : vector<128x128xi32>
      %cst_16 = arith.constant -1.000000e+30 : f32
      %25 = vector.broadcast %cst_16 : f32 to vector<128x128xf32>
      %26 = arith.select %24, %21, %25 : vector<128x128xi1>, vector<128x128xf32>
      %cst_17 = arith.constant dense<0xFF800000> : vector<128xf32>
      %27 = vector.multi_reduction <maximumf>, %26, %cst_17 [1] : vector<128x128xf32> to vector<128xf32>
      %28 = vector.shape_cast %27 : vector<128xf32> to vector<128x1xf32>
      %29 = vector.broadcast %28 : vector<128x1xf32> to vector<128x128xf32>
      %30 = arith.subf %26, %29 : vector<128x128xf32>
      %31 = math.exp %30 : vector<128x128xf32>
      %cst_18 = arith.constant dense<0.000000e+00> : vector<128xf32>
      %32 = vector.multi_reduction <add>, %31, %cst_18 [1] : vector<128x128xf32> to vector<128xf32>
      %33 = vector.shape_cast %32 : vector<128xf32> to vector<128x1xf32>
      %34 = math.log %33 : vector<128x1xf32>
      %35 = vector.broadcast %34 : vector<128x1xf32> to vector<128x128xf32>
      %36 = arith.subf %30, %35 : vector<128x128xf32>
      %c0_19 = arith.constant 0 : index
      %c0_20 = arith.constant 0 : index
      %37 = vector.load %arg6[%c0_19, %c0_20] : memref<128x128xf32, #tpu.memory_space<vmem>>, vector<128x128xf32>
      tpu.vector_store %arg6[%c0_19, %c0_20], %36 {strides = array<i32>} : memref<128x128xf32, #tpu.memory_space<vmem>>, vector<128x128xf32>,
    } else {
    }
    return
  }
  func.func @transform_0(%arg0: i32, %arg1: i32) -> (i32, i32) {
    %c0_i32 = arith.constant 0 : i32
    return %arg0, %arg1 : i32, i32
  }
  func.func @transform_1(%arg0: i32, %arg1: i32) -> (i32, i32) {
    %c0_i32 = arith.constant 0 : i32
    %c0_i32_0 = arith.constant 0 : i32
    %c0_i32_1 = arith.constant 0 : i32
    return %c0_i32, %c0_i32_0 : i32, i32
  }
  func.func @transform_2(%arg0: i32, %arg1: i32) -> (i32, i32) {
    %c0_i32 = arith.constant 0 : i32
    %c0_i32_0 = arith.constant 0 : i32
    %c0_i32_1 = arith.constant 0 : i32
    return %c0_i32, %c0_i32_0 : i32, i32
  }
  func.func @transform_3(%arg0: i32, %arg1: i32) -> (i32, i32) {
    %c0_i32 = arith.constant 0 : i32
    %c0_i32_0 = arith.constant 0 : i32
    %c0_i32_1 = arith.constant 0 : i32
    return %c0_i32, %c0_i32_0 : i32, i32
  }
  func.func @transform_4(%arg0: i32, %arg1: i32) -> (i32, i32) {
    %c0_i32 = arith.constant 0 : i32
    %c0_i32_0 = arith.constant 0 : i32
    return %arg0, %c0_i32 : i32, i32
  }
}

</mosaic_0001>

<bundles_post_ra>
// kernel: _lambda_.2
= control target key start
LH: loop header
LB: loop body
LE: loop exit
PB: predicated region body
PF: predicated region fallthrough
CT: control target
= control target key end

     0   :  { %s1469_s15 = smov 0   ;;  %s1471_s16 = smov 0   ;;  %s1630_s0 = inlined_call_operand.vmem [shape: bf16[256,256], index: 0, kind: input, shape index: {}]   ;;  %s1631_s1 = inlined_call_operand.vmem [shape: bf16[256,128], index: 1, kind: input, shape index: {}]   ;;  %s1632_s2 = inlined_call_operand.vmem [shape: bf16[128,128], index: 2, kind: input, shape index: {}]   ;;  %s1633_s3 = inlined_call_operand.vmem [shape: f32[1,128], index: 3, kind: input, shape index: {}]   ;;  %s1634_s4 = inlined_call_operand.vmem [shape: bf16[256,128], index: 4, kind: output, shape index: {}]  }
   0x1   :  { %s1473_s17 = smov 0  }
   0x2 LB: > { %s26_s18 = sadd.s32 1, %s1438_s16  ;;  %p1083_p0 = scmp.ge.s32.totalorder %s1442_s17, 1  ;;  %s1442_s17 = sphi %s1473_s17, %s14_s17   ;;  %s1438_s16 = sphi %s1471_s16, %s1636_s16   ;;  %s1434_s15 = sphi %s1469_s15, %s1635_s15  }
   0x3   : > { %p28_p1 = scmp.ge.s32.totalorder %s26_s18, 2  ;;  %p183_p2 = scmp.lt.s32.totalorder %s1442_s17, 3 }
   0x5   : > { %s1638_s18 = smov (%p28_p1, %s26_s18), 0  ;;  %p184_p3 = pnand %p1083_p0, %p183_p2 }
   0x6   : > { %v1372_v0 = vld [vmem:[%s1632_s2] sm:$0xff] (!%p184_p3)   ;;  %v1373_v1 = vld [vmem:[%s1632_s2 + $0x8] sm:$0xff] (!%p184_p3)   ;;  %v1374_v2 = vld [vmem:[%s1632_s2 + $0x10] sm:$0xff] (!%p184_p3)   ;;  %s1084_s23 = sshll.u32 (!%p184_p3), %s1434_s15, 4 }
   0x7   : > { %187 = sbr.rel (%p184_p3) target bundleno = 600 (0x258), region = 36  ;;  %1300 = vmatprep.subr.bf16.mxu0 (!%p184_p3), %v1372_v0  ;;  %v1375_v3 = vld [vmem:[%s1632_s2 + $0x18] sm:$0xff] (!%p184_p3)   ;;  %v1380_v4 = vld [vmem:[%s1631_s1] sm:$0xff] (!%p184_p3)   ;;  %v1377_v6 = vld [vmem:[%s1632_s2 + $0x28] sm:$0xff] (!%p184_p3)   ;;  %p216_p4 = scmp.lt.s32.totalorder (!%p184_p3), %s1084_s23, 31 }
   0x8   : > { %1301 = vmatpush3.bf16.msra.mxu0 (!%p184_p3), %v1372_v0  ;;  %1316 = vmatprep.mubr.bf16.mxu0 (!%p184_p3), %v1380_v4  ;;  %v1376_v5 = vld [vmem:[%s1632_s2 + $0x20] sm:$0xff] (!%p184_p3)   ;;  %v1378_v7 = vld [vmem:[%s1632_s2 + $0x30] sm:$0xff] (!%p184_p3)   ;;  %v1379_v8 = vld [vmem:[%s1632_s2 + $0x38] sm:$0xff] (!%p184_p3)  }
   0x9   : > { %1302 = vmatprep.subr.bf16.mxu0 (!%p184_p3), %v1373_v1  ;;  %v1381_v9 = vld [vmem:[%s1631_s1 + $0x8] sm:$0xff] (!%p184_p3)   ;;  %v1382_v10 = vld [vmem:[%s1631_s1 + $0x10] sm:$0xff] (!%p184_p3)   ;;  %v1383_v11 = vld [vmem:[%s1631_s1 + $0x18] sm:$0xff] (!%p184_p3)  }
   0xa   : > { %v1384_v12 = vld [vmem:[%s1631_s1 + $0x20] sm:$0xff] (!%p184_p3)   ;;  %v1385_v13 = vld [vmem:[%s1631_s1 + $0x28] sm:$0xff] (!%p184_p3)   ;;  %v1386_v14 = vld [vmem:[%s1631_s1 + $0x30] sm:$0xff] (!%p184_p3)  }
   0xb   : > { %v1387_v15 = vld [vmem:[%s1631_s1 + $0x38] sm:$0xff] (!%p184_p3)   ;;  %v1388_v16 = vld [vmem:[%s1631_s1 + $0x40] sm:$0xff] (!%p184_p3)   ;;  %v1389_v17 = vld [vmem:[%s1631_s1 + $0x48] sm:$0xff] (!%p184_p3)  }
   0xc   : > { %1303 = vmatpush3.bf16.msra.mxu0 (!%p184_p3), %v1373_v1  ;;  %v1390_v18 = vld [vmem:[%s1631_s1 + $0x50] sm:$0xff] (!%p184_p3)   ;;  %v1391_v19 = vld [vmem:[%s1631_s1 + $0x58] sm:$0xff] (!%p184_p3)   ;;  %v1392_v20 = vld [vmem:[%s1631_s1 + $0x60] sm:$0xff] (!%p184_p3)  }
   0xd   : > { %1304 = vmatprep.subr.bf16.mxu0 (!%p184_p3), %v1374_v2  ;;  %v1393_v21 = vld [vmem:[%s1631_s1 + $0x68] sm:$0xff] (!%p184_p3)   ;;  %v1394_v22 = vld [vmem:[%s1631_s1 + $0x70] sm:$0xff] (!%p184_p3)   ;;  %v1395_v23 = vld [vmem:[%s1631_s1 + $0x78] sm:$0xff] (!%p184_p3)  }
   0xe   : > { %s1640_s23 = smov (!%p216_p4, %s1084_s23), 31 }
   0xf   : > { %s1148_s24 = sshll.u32 %s1640_s23, 3  ;;  %s1088_s29 = sshll.u32 %s1640_s23, 2 }
  0x10   : > { %1305 = vmatpush3.bf16.msra.mxu0 %v1374_v2  ;;  %s1568_s27 = scalar_lea.vmem %s1630_s0, %s1148_s24  ;;  %s1597_s6 = scalar_lea.vmem %s1634_s4, %s1088_s29 }
  0x11   : > { %1306 = vmatprep.subr.bf16.mxu0 %v1375_v3  ;;  %v1398_v24 = vld [vmem:[%s1568_s27 + $0x4] ss:$8 sps:$4 sm:$0xff]  }
  0x12   : > { %771 = vmatprep.mubr.bf16.mxu1 %v1398_v24 }
  0x14   : > { %1307 = vmatpush3.bf16.msra.mxu0 %v1375_v3 }
  0x15   : > { %1308 = vmatprep.subr.bf16.mxu0 %v1376_v5 }
  0x18   : > { %1309 = vmatpush3.bf16.msra.mxu0 %v1376_v5 }
  0x19   : > { %1310 = vmatprep.subr.bf16.mxu0 %v1377_v6 }
  0x1c   : > { %1311 = vmatpush3.bf16.msra.mxu0 %v1377_v6 }
  0x1d   : > { %1312 = vmatprep.subr.bf16.mxu0 %v1378_v7 }
  0x20   : > { %1313 = vmatpush3.bf16.msra.mxu0 %v1378_v7 }
  0x21   : > { %1314 = vmatprep.subr.bf16.mxu0 %v1379_v8 }
  0x24   : > { %1315 = vmatpush3.bf16.msra.mxu0 %v1379_v8 }
  0x27   : > { %1317 = vmatmul.mubr.bf16.vlgmr.msra.gmra.mrb[0].mxu0 %v1381_v9  ;;  %v1396_v9 = vld [vmem:[%s1568_s27] ss:$8 sps:$4 sm:$0xff]  }
  0x28   : > { %1320 = vmatprep.mubr.bf16.mxu0 %v1382_v10  ;;  %v1399_v10 = vld [vmem:[%s1568_s27 + $0x14] ss:$8 sps:$4 sm:$0xff]  }
  0x2f   : > { %1321 = vmatmul.mubr.bf16.gmra.mrb[4].mxu0 %v1383_v11  ;;  %v1401_v11 = vld [vmem:[%s1568_s27 + $0x10] ss:$8 sps:$4 sm:$0xff]  }
  0x30   : > { %1324 = vmatprep.mubr.bf16.mxu0 %v1384_v12  ;;  %v1402_v12 = vld [vmem:[%s1568_s27 + $0x24] ss:$8 sps:$4 sm:$0xff]  }
  0x37   : > { %1325 = vmatmul.mubr.bf16.gmra.mrb[8].mxu0 %v1385_v13  ;;  %v1404_v13 = vld [vmem:[%s1568_s27 + $0x20] ss:$8 sps:$4 sm:$0xff]  }
  0x38   : > { %1328 = vmatprep.mubr.bf16.mxu0 %v1386_v14  ;;  %v1405_v14 = vld [vmem:[%s1568_s27 + $0x34] ss:$8 sps:$4 sm:$0xff]  }
  0x3f   : > { %1329 = vmatmul.mubr.bf16.gmra.mrb[12].mxu0 %v1387_v15  ;;  %v1407_v15 = vld [vmem:[%s1568_s27 + $0x30] ss:$8 sps:$4 sm:$0xff]  }
  0x40   : > { %1332 = vmatprep.mubr.bf16.mxu0 %v1388_v16  ;;  %v1408_v16 = vld [vmem:[%s1568_s27 + $0x44] ss:$8 sps:$4 sm:$0xff]  }
  0x47   : > { %1333 = vmatmul.mubr.bf16.gmra.mrb[16].mxu0 %v1389_v17  ;;  %v1410_v17 = vld [vmem:[%s1568_s27 + $0x40] ss:$8 sps:$4 sm:$0xff]  }
  0x48   : > { %1336 = vmatprep.mubr.bf16.mxu0 %v1390_v18  ;;  %v1411_v18 = vld [vmem:[%s1568_s27 + $0x54] ss:$8 sps:$4 sm:$0xff]  }
  0x4f   : > { %1337 = vmatmul.mubr.bf16.gmra.mrb[20].mxu0 %v1391_v19  ;;  %v1413_v19 = vld [vmem:[%s1568_s27 + $0x50] ss:$8 sps:$4 sm:$0xff]  }
  0x50   : > { %1340 = vmatprep.mubr.bf16.mxu0 %v1392_v20  ;;  %v1414_v20 = vld [vmem:[%s1568_s27 + $0x64] ss:$8 sps:$4 sm:$0xff]  }
  0x57   : > { %1341 = vmatmul.mubr.bf16.gmra.mrb[24].mxu0 %v1393_v21  ;;  %v1416_v21 = vld [vmem:[%s1568_s27 + $0x60] ss:$8 sps:$4 sm:$0xff]  }
  0x58   : > { %1344 = vmatprep.mubr.bf16.mxu0 %v1394_v22  ;;  %v1417_v22 = vld [vmem:[%s1568_s27 + $0x74] ss:$8 sps:$4 sm:$0xff]  }
  0x5f   : > { %1345 = vmatmul.mubr.bf16.gmra.mrb[28].mxu0 %v1395_v23  ;;  %v1419_v23 = vld [vmem:[%s1568_s27 + $0x70] ss:$8 sps:$4 sm:$0xff]  }
  0xfa   : > { %v1318_v25 = vpop.f32.mrb[0].mxu0 }
  0xfb   : > { %v484_v26 = vpop.f32.mrb[1].mxu0 }
  0xfc   : > { %v1319_v27 = vpop.f32.mrb[2].mxu0 }
  0xfd   : > { %v644_v28 = vpack.c.bf16 %v1319_v27, %v1318_v25  ;;  %v487_v29 = vpop.f32.mrb[3].mxu0 }
  0xfe   : > { %v643_v30 = vpack.c.bf16 %v487_v29, %v484_v26  ;;  %v1589_v26 = vld [vmem:[%s1633_s3] ss:$0 sm:$0xff] }
 0x102   : > { %v1322_v31 = vpop.f32.mrb[4].mxu0 }
 0x103   : > { %v500_v32 = vpop.f32.mrb[5].mxu0 }
 0x104   : > { %v1323_v33 = vpop.f32.mrb[6].mxu0 }
 0x105   : > { %v646_v34 = vpack.c.bf16 %v1323_v33, %v1322_v31  ;;  %v503_v35 = vpop.f32.mrb[7].mxu0 }
 0x106   : > { %v645_v36 = vpack.c.bf16 %v503_v35, %v500_v32 }
 0x10a   : > { %v1326_v37 = vpop.f32.mrb[8].mxu0 }
 0x10b   : > { %v516_v38 = vpop.f32.mrb[9].mxu0 }
 0x10c   : > { %v1327_v39 = vpop.f32.mrb[10].mxu0 }
 0x10d   : > { %v648_v40 = vpack.c.bf16 %v1327_v39, %v1326_v37  ;;  %v519_v41 = vpop.f32.mrb[11].mxu0 }
 0x10e   : > { %v647_v42 = vpack.c.bf16 %v519_v41, %v516_v38 }
 0x112   : > { %v1330_v43 = vpop.f32.mrb[12].mxu0 }
 0x113   : > { %v532_v44 = vpop.f32.mrb[13].mxu0 }
 0x114   : > { %v1331_v45 = vpop.f32.mrb[14].mxu0 }
 0x115   : > { %v650_v46 = vpack.c.bf16 %v1331_v45, %v1330_v43  ;;  %v535_v47 = vpop.f32.mrb[15].mxu0 }
 0x116   : > { %v649_v48 = vpack.c.bf16 %v535_v47, %v532_v44 }
 0x11a   : > { %v1334_v49 = vpop.f32.mrb[16].mxu0 }
 0x11b   : > { %v548_v50 = vpop.f32.mrb[17].mxu0 }
 0x11c   : > { %v1335_v51 = vpop.f32.mrb[18].mxu0 }
 0x11d   : > { %v652_v52 = vpack.c.bf16 %v1335_v51, %v1334_v49  ;;  %v551_v53 = vpop.f32.mrb[19].mxu0 }
 0x11e   : > { %v651_v54 = vpack.c.bf16 %v551_v53, %v548_v50 }
 0x120   : > { %1236 = vmatprep.subr.bf16.mxu1 %v651_v54 }
 0x121   : > { %1237 = vmatpush3.bf16.msra.mxu1 %v643_v30 }
 0x122   : > { %v1338_v55 = vpop.f32.mrb[20].mxu0  ;;  %1238 = vmatprep.subr.bf16.mxu1 %v652_v52 }
 0x123   : > { %v564_v56 = vpop.f32.mrb[21].mxu0 }
 0x124   : > { %v1339_v57 = vpop.f32.mrb[22].mxu0 }
 0x125   : > { %v654_v58 = vpack.c.bf16 %v1339_v57, %v1338_v55  ;;  %v567_v59 = vpop.f32.mrb[23].mxu0  ;;  %1239 = vmatpush3.bf16.msra.mxu1 %v644_v28 }
 0x126   : > { %v653_v60 = vpack.c.bf16 %v567_v59, %v564_v56 }
 0x128   : > { %1240 = vmatprep.subr.bf16.mxu1 %v653_v60 }
 0x129   : > { %1241 = vmatpush3.bf16.msra.mxu1 %v645_v36 }
 0x12a   : > { %v1342_v61 = vpop.f32.mrb[24].mxu0  ;;  %1242 = vmatprep.subr.bf16.mxu1 %v654_v58 }
 0x12b   : > { %v580_v62 = vpop.f32.mrb[25].mxu0 }
 0x12c   : > { %v1343_v63 = vpop.f32.mrb[26].mxu0 }
 0x12d   : > { %v656_v0 = vpack.c.bf16 %v1343_v63, %v1342_v61  ;;  %v583_v1 = vpop.f32.mrb[27].mxu0  ;;  %1243 = vmatpush3.bf16.msra.mxu1 %v646_v34 }
 0x12e   : > { %v655_v2 = vpack.c.bf16 %v583_v1, %v580_v62 }
 0x130   : > { %1244 = vmatprep.subr.bf16.mxu1 %v655_v2 }
 0x131   : > { %1245 = vmatpush3.bf16.msra.mxu1 %v647_v42 }
 0x132   : > { %v1346_v3 = vpop.f32.mrb[28].mxu0  ;;  %1246 = vmatprep.subr.bf16.mxu1 %v656_v0 }
 0x133   : > { %v596_v4 = vpop.f32.mrb[29].mxu0 }
 0x134   : > { %v1347_v5 = vpop.f32.mrb[30].mxu0 }
 0x135   : > { %v658_v6 = vpack.c.bf16 %v1347_v5, %v1346_v3  ;;  %v599_v7 = vpop.f32.mrb[31].mxu0  ;;  %1247 = vmatpush3.bf16.msra.mxu1 %v648_v40 }
 0x136   : > { %v657_v8 = vpack.c.bf16 %v599_v7, %v596_v4 }
 0x138   : > { %1248 = vmatprep.subr.bf16.mxu1 %v657_v8 }
 0x139   : > { %1249 = vmatpush3.bf16.msra.mxu1 %v649_v48 }
 0x13a   : > { %1250 = vmatprep.subr.bf16.mxu1 %v658_v6 }
 0x13d   : > { %1251 = vmatpush3.bf16.msra.mxu1 %v650_v46 }
 0x140   : > { %772 = vmatmul.mubr.bf16.vlgmr.msra.gmra.mrb[0].mxu1 %v1396_v9 }
 0x141   : > { %779 = vmatprep.mubr.bf16.mxu1 %v1399_v10 }
 0x148   : > { %780 = vmatmul.mubr.bf16.gmra.mrb[4].mxu1 %v1401_v11 }
 0x149   : > { %787 = vmatprep.mubr.bf16.mxu1 %v1402_v12 }
 0x150   : > { %788 = vmatmul.mubr.bf16.gmra.mrb[8].mxu1 %v1404_v13 }
 0x151   : > { %795 = vmatprep.mubr.bf16.mxu1 %v1405_v14 }
 0x158   : > { %796 = vmatmul.mubr.bf16.gmra.mrb[12].mxu1 %v1407_v15 }
 0x159   : > { %803 = vmatprep.mubr.bf16.mxu1 %v1408_v16 }
 0x160   : > { %804 = vmatmul.mubr.bf16.gmra.mrb[16].mxu1 %v1410_v17 }
 0x161   : > { %811 = vmatprep.mubr.bf16.mxu1 %v1411_v18 }
 0x168   : > { %812 = vmatmul.mubr.bf16.gmra.mrb[20].mxu1 %v1413_v19 }
 0x169   : > { %819 = vmatprep.mubr.bf16.mxu1 %v1414_v20 }
 0x170   : > { %820 = vmatmul.mubr.bf16.gmra.mrb[24].mxu1 %v1416_v21 }
 0x171   : > { %827 = vmatprep.mubr.bf16.mxu1 %v1417_v22 }
 0x178   : > { %828 = vmatmul.mubr.bf16.gmra.mrb[28].mxu1 %v1419_v23 }
 0x213   : > { %v1252_v24 = vpop.f32.mrb[0].mxu1 }
 0x214   : > { %v1253_v25 = vpop.f32.mrb[1].mxu1 }
 0x215   : > { %v1254_v27 = vadd.f32 %v1253_v25, %v1252_v24  ;;  %v1255_v28 = vpop.f32.mrb[2].mxu1 }
 0x216   : > { %v1256_v29 = vpop.f32.mrb[3].mxu1 }
 0x217   : > { %v894_v30 = vadd.f32 %v1254_v27, %v1589_v26  ;;  %v1257_v31 = vadd.f32 %v1256_v29, %v1255_v28 }
 0x219   : > { %v895_v32 = vadd.f32 %v1257_v31, %v1589_v26  ;;  %v910_v33 = vmax.f32 %v894_v30, 0.0 }
 0x21b   : > { %v911_v34 = vmax.f32 %v895_v32, 0.0  ;;  %v1258_v35 = vpop.f32.mrb[4].mxu1 }
 0x21c   : > { %v1259_v36 = vpop.f32.mrb[5].mxu1 }
 0x21d   : > { %v1168_v37 = vpack.c.bf16 %v911_v34, %v910_v33  ;;  %v1260_v38 = vadd.f32 %v1259_v36, %v1258_v35  ;;  %v1261_v39 = vpop.f32.mrb[6].mxu1 }
 0x21e   : > { %v1262_v40 = vpop.f32.mrb[7].mxu1 }
 0x21f   : > { %1169 = vst [vmem:[%s1597_s6] sm:$0xff] %v1168_v37   ;;  %v896_v41 = vadd.f32 %v1260_v38, %v1589_v26  ;;  %v1263_v42 = vadd.f32 %v1262_v40, %v1261_v39 }
 0x221   : > { %v897_v43 = vadd.f32 %v1263_v42, %v1589_v26  ;;  %v912_v44 = vmax.f32 %v896_v41, 0.0 }
 0x223   : > { %v913_v45 = vmax.f32 %v897_v43, 0.0  ;;  %v1264_v46 = vpop.f32.mrb[8].mxu1 }
 0x224   : > { %v1265_v47 = vpop.f32.mrb[9].mxu1 }
 0x225   : > { %v1173_v48 = vpack.c.bf16 %v913_v45, %v912_v44  ;;  %v1266_v49 = vadd.f32 %v1265_v47, %v1264_v46  ;;  %v1267_v50 = vpop.f32.mrb[10].mxu1 }
 0x226   : > { %v1268_v51 = vpop.f32.mrb[11].mxu1 }
 0x227   : > { %1205 = vst [vmem:[%s1597_s6 + $0x8] sm:$0xff] %v1173_v48   ;;  %v898_v52 = vadd.f32 %v1266_v49, %v1589_v26  ;;  %v1269_v53 = vadd.f32 %v1268_v51, %v1267_v50 }
 0x229   : > { %v899_v54 = vadd.f32 %v1269_v53, %v1589_v26  ;;  %v914_v55 = vmax.f32 %v898_v52, 0.0 }
 0x22b   : > { %v915_v56 = vmax.f32 %v899_v54, 0.0  ;;  %v1270_v57 = vpop.f32.mrb[12].mxu1 }
 0x22c   : > { %v1271_v58 = vpop.f32.mrb[13].mxu1 }
 0x22d   : > { %v1178_v59 = vpack.c.bf16 %v915_v56, %v914_v55  ;;  %v1272_v60 = vadd.f32 %v1271_v58, %v1270_v57  ;;  %v1273_v61 = vpop.f32.mrb[14].mxu1 }
 0x22e   : > { %v1274_v62 = vpop.f32.mrb[15].mxu1 }
 0x22f   : > { %1206 = vst [vmem:[%s1597_s6 + $0x10] sm:$0xff] %v1178_v59   ;;  %v900_v63 = vadd.f32 %v1272_v60, %v1589_v26  ;;  %v1275_v0 = vadd.f32 %v1274_v62, %v1273_v61 }
 0x231   : > { %v901_v1 = vadd.f32 %v1275_v0, %v1589_v26  ;;  %v916_v2 = vmax.f32 %v900_v63, 0.0 }
 0x233   : > { %v917_v3 = vmax.f32 %v901_v1, 0.0  ;;  %v1276_v4 = vpop.f32.mrb[16].mxu1 }
 0x234   : > { %v1277_v5 = vpop.f32.mrb[17].mxu1 }
 0x235   : > { %v1183_v6 = vpack.c.bf16 %v917_v3, %v916_v2  ;;  %v1278_v7 = vadd.f32 %v1277_v5, %v1276_v4  ;;  %v1279_v8 = vpop.f32.mrb[18].mxu1 }
 0x236   : > { %v1280_v9 = vpop.f32.mrb[19].mxu1 }
 0x237   : > { %1207 = vst [vmem:[%s1597_s6 + $0x18] sm:$0xff] %v1183_v6   ;;  %v902_v10 = vadd.f32 %v1278_v7, %v1589_v26  ;;  %v1281_v11 = vadd.f32 %v1280_v9, %v1279_v8 }
 0x239   : > { %v903_v12 = vadd.f32 %v1281_v11, %v1589_v26  ;;  %v918_v13 = vmax.f32 %v902_v10, 0.0 }
 0x23b   : > { %v919_v14 = vmax.f32 %v903_v12, 0.0  ;;  %v1282_v15 = vpop.f32.mrb[20].mxu1 }
 0x23c   : > { %v1283_v16 = vpop.f32.mrb[21].mxu1 }
 0x23d   : > { %v1188_v17 = vpack.c.bf16 %v919_v14, %v918_v13  ;;  %v1284_v18 = vadd.f32 %v1283_v16, %v1282_v15  ;;  %v1285_v19 = vpop.f32.mrb[22].mxu1 }
 0x23e   : > { %v1286_v20 = vpop.f32.mrb[23].mxu1 }
 0x23f   : > { %1208 = vst [vmem:[%s1597_s6 + $0x20] sm:$0xff] %v1188_v17   ;;  %v904_v21 = vadd.f32 %v1284_v18, %v1589_v26  ;;  %v1287_v22 = vadd.f32 %v1286_v20, %v1285_v19 }
 0x241   : > { %v905_v23 = vadd.f32 %v1287_v22, %v1589_v26  ;;  %v920_v24 = vmax.f32 %v904_v21, 0.0 }
 0x243   : > { %v921_v25 = vmax.f32 %v905_v23, 0.0  ;;  %v1288_v27 = vpop.f32.mrb[24].mxu1 }
 0x244   : > { %v1289_v28 = vpop.f32.mrb[25].mxu1 }
 0x245   : > { %v1193_v29 = vpack.c.bf16 %v921_v25, %v920_v24  ;;  %v1290_v30 = vadd.f32 %v1289_v28, %v1288_v27  ;;  %v1291_v31 = vpop.f32.mrb[26].mxu1 }
 0x246   : > { %v1292_v32 = vpop.f32.mrb[27].mxu1 }
 0x247   : > { %1209 = vst [vmem:[%s1597_s6 + $0x28] sm:$0xff] %v1193_v29   ;;  %v906_v33 = vadd.f32 %v1290_v30, %v1589_v26  ;;  %v1293_v34 = vadd.f32 %v1292_v32, %v1291_v31 }
 0x249   : > { %v907_v35 = vadd.f32 %v1293_v34, %v1589_v26  ;;  %v922_v36 = vmax.f32 %v906_v33, 0.0 }
 0x24b   : > { %v923_v37 = vmax.f32 %v907_v35, 0.0  ;;  %v1294_v38 = vpop.f32.mrb[28].mxu1 }
 0x24c   : > { %v1295_v39 = vpop.f32.mrb[29].mxu1 }
 0x24d   : > { %v1198_v40 = vpack.c.bf16 %v923_v37, %v922_v36  ;;  %v1296_v41 = vadd.f32 %v1295_v39, %v1294_v38  ;;  %v1297_v42 = vpop.f32.mrb[30].mxu1 }
 0x24e   : > { %v1298_v43 = vpop.f32.mrb[31].mxu1 }
 0x24f   : > { %1210 = vst [vmem:[%s1597_s6 + $0x30] sm:$0xff] %v1198_v40   ;;  %v908_v44 = vadd.f32 %v1296_v41, %v1589_v26  ;;  %v1299_v45 = vadd.f32 %v1298_v43, %v1297_v42 }
 0x251   : > { %v909_v46 = vadd.f32 %v1299_v45, %v1589_v26  ;;  %v924_v47 = vmax.f32 %v908_v44, 0.0 }
 0x253   : > { %v925_v48 = vmax.f32 %v909_v46, 0.0 }
 0x255   : > { %v1203_v49 = vpack.c.bf16 %v925_v48, %v924_v47 }
 0x257   : > { %1211 = vst [vmem:[%s1597_s6 + $0x38] sm:$0xff] %v1203_v49  }
 0x258 PF: > { %s14_s17 = sadd.s32 1, %s1442_s17   ;;  %s1635_s15 = smov %s1438_s16 }
 0x259   : > { %p11_p5 = scmp.ge.s32.totalorder %s14_s17, 4   ;;  %s1636_s16 = smov %s1638_s18 }
 0x25b   :  { %13 = sbr.rel (!%p11_p5) target bundleno = 2 (0x2), region = 75 }

// kernel: _lambda_.3
= control target key start
LH: loop header
LB: loop body
LE: loop exit
PB: predicated region body
PF: predicated region fallthrough
CT: control target
= control target key end

     0   :  { %s1553_s15 = smov 0   ;;  %s1555_s16 = smov 0   ;;  %s1888_s0 = inlined_call_operand.vmem [shape: bf16[256,256], index: 0, kind: input, shape index: {}]   ;;  %s1889_s1 = inlined_call_operand.vmem [shape: bf16[256,128], index: 1, kind: input, shape index: {}]   ;;  %s1890_s2 = inlined_call_operand.vmem [shape: bf16[128,128], index: 2, kind: input, shape index: {}]   ;;  %s1891_s3 = inlined_call_operand.vmem [shape: f32[1,128], index: 3, kind: input, shape index: {}]   ;;  %s1892_s4 = inlined_call_operand.vmem [shape: f32[256,128], index: 4, kind: output, shape index: {}]  }
   0x1   :  { %s1557_s17 = smov 0  }
   0x2 LB: > { %s26_s18 = sadd.s32 1, %s1522_s16  ;;  %p1182_p0 = scmp.ge.s32.totalorder %s1526_s17, 1  ;;  %s1526_s17 = sphi %s1557_s17, %s14_s17   ;;  %s1522_s16 = sphi %s1555_s16, %s1894_s16   ;;  %s1518_s15 = sphi %s1553_s15, %s1893_s15  }
   0x3   : > { %p28_p1 = scmp.ge.s32.totalorder %s26_s18, 2  ;;  %p183_p2 = scmp.lt.s32.totalorder %s1526_s17, 3 }
   0x5   : > { %s1896_s18 = smov (%p28_p1, %s26_s18), 0  ;;  %p184_p3 = pnand %p1182_p0, %p183_p2 }
   0x6   : > { %v1392_v0 = vld [vmem:[%s1890_s2] sm:$0xff] (!%p184_p3)   ;;  %v1393_v1 = vld [vmem:[%s1890_s2 + $0x8] sm:$0xff] (!%p184_p3)   ;;  %v1394_v2 = vld [vmem:[%s1890_s2 + $0x10] sm:$0xff] (!%p184_p3)   ;;  %s1183_s23 = sshll.u32 (!%p184_p3), %s1518_s15, 4 }
   0x7   : > { %187 = sbr.rel (%p184_p3) target bundleno = 911 (0x38f), region = 36  ;;  %1320 = vmatprep.subr.bf16.mxu0 (!%p184_p3), %v1392_v0  ;;  %v1395_v3 = vld [vmem:[%s1890_s2 + $0x18] sm:$0xff] (!%p184_p3)   ;;  %v1400_v4 = vld [vmem:[%s1889_s1] sm:$0xff] (!%p184_p3)   ;;  %v1397_v6 = vld [vmem:[%s1890_s2 + $0x28] sm:$0xff] (!%p184_p3)   ;;  %p216_p4 = scmp.lt.s32.totalorder (!%p184_p3), %s1183_s23, 31 }
   0x8   : > { %1321 = vmatpush3.bf16.msra.mxu0 (!%p184_p3), %v1392_v0  ;;  %1336 = vmatprep.mubr.bf16.mxu0 (!%p184_p3), %v1400_v4  ;;  %v1396_v5 = vld [vmem:[%s1890_s2 + $0x20] sm:$0xff] (!%p184_p3)   ;;  %v1398_v7 = vld [vmem:[%s1890_s2 + $0x30] sm:$0xff] (!%p184_p3)   ;;  %v1399_v8 = vld [vmem:[%s1890_s2 + $0x38] sm:$0xff] (!%p184_p3)  }
   0x9   : > { %1322 = vmatprep.subr.bf16.mxu0 (!%p184_p3), %v1393_v1  ;;  %v1401_v9 = vld [vmem:[%s1889_s1 + $0x8] sm:$0xff] (!%p184_p3)   ;;  %v1402_v10 = vld [vmem:[%s1889_s1 + $0x10] sm:$0xff] (!%p184_p3)   ;;  %v1403_v11 = vld [vmem:[%s1889_s1 + $0x18] sm:$0xff] (!%p184_p3)  }
   0xa   : > { %v1404_v12 = vld [vmem:[%s1889_s1 + $0x20] sm:$0xff] (!%p184_p3)   ;;  %v1405_v13 = vld [vmem:[%s1889_s1 + $0x28] sm:$0xff] (!%p184_p3)   ;;  %v1406_v14 = vld [vmem:[%s1889_s1 + $0x30] sm:$0xff] (!%p184_p3)  }
   0xb   : > { %v1407_v15 = vld [vmem:[%s1889_s1 + $0x38] sm:$0xff] (!%p184_p3)   ;;  %v1408_v16 = vld [vmem:[%s1889_s1 + $0x40] sm:$0xff] (!%p184_p3)   ;;  %v1409_v17 = vld [vmem:[%s1889_s1 + $0x48] sm:$0xff] (!%p184_p3)  }
   0xc   : > { %1323 = vmatpush3.bf16.msra.mxu0 (!%p184_p3), %v1393_v1  ;;  %v1410_v18 = vld [vmem:[%s1889_s1 + $0x50] sm:$0xff] (!%p184_p3)   ;;  %v1411_v19 = vld [vmem:[%s1889_s1 + $0x58] sm:$0xff] (!%p184_p3)   ;;  %v1412_v20 = vld [vmem:[%s1889_s1 + $0x60] sm:$0xff] (!%p184_p3)  }
   0xd   : > { %1324 = vmatprep.subr.bf16.mxu0 (!%p184_p3), %v1394_v2  ;;  %v1413_v21 = vld [vmem:[%s1889_s1 + $0x68] sm:$0xff] (!%p184_p3)   ;;  %v1414_v22 = vld [vmem:[%s1889_s1 + $0x70] sm:$0xff] (!%p184_p3)   ;;  %v1415_v23 = vld [vmem:[%s1889_s1 + $0x78] sm:$0xff] (!%p184_p3)  }
   0xe   : > { %s1898_s23 = smov (!%p216_p4, %s1183_s23), 31 }
   0xf   : > { %s1231_s24 = sshll.u32 %s1898_s23, 3 }
  0x10   : > { %1325 = vmatpush3.bf16.msra.mxu0 %v1394_v2  ;;  %s1654_s27 = scalar_lea.vmem %s1888_s0, %s1231_s24  ;;  %s1845_s5 = scalar_lea.vmem %s1892_s4, %s1231_s24 }
  0x11   : > { %1326 = vmatprep.subr.bf16.mxu0 %v1395_v3  ;;  %v1418_v24 = vld [vmem:[%s1654_s27 + $0x4] ss:$8 sps:$4 sm:$0xff]  }
  0x12   : > { %771 = vmatprep.mubr.bf16.mxu1 %v1418_v24  ;;  %v910_v24 = vlaneseq }
  0x14   : > { %1327 = vmatpush3.bf16.msra.mxu0 %v1395_v3 }
  0x15   : > { %1328 = vmatprep.subr.bf16.mxu0 %v1396_v5 }
  0x18   : > { %1329 = vmatpush3.bf16.msra.mxu0 %v1396_v5 }
  0x19   : > { %1330 = vmatprep.subr.bf16.mxu0 %v1397_v6 }
  0x1c   : > { %1331 = vmatpush3.bf16.msra.mxu0 %v1397_v6 }
  0x1d   : > { %1332 = vmatprep.subr.bf16.mxu0 %v1398_v7 }
  0x20   : > { %1333 = vmatpush3.bf16.msra.mxu0 %v1398_v7 }
  0x21   : > { %1334 = vmatprep.subr.bf16.mxu0 %v1399_v8 }
  0x24   : > { %1335 = vmatpush3.bf16.msra.mxu0 %v1399_v8 }
  0x27   : > { %1337 = vmatmul.mubr.bf16.vlgmr.msra.gmra.mrb[0].mxu0 %v1401_v9  ;;  %v1416_v9 = vld [vmem:[%s1654_s27] ss:$8 sps:$4 sm:$0xff]  }
  0x28   : > { %1340 = vmatprep.mubr.bf16.mxu0 %v1402_v10  ;;  %v1419_v10 = vld [vmem:[%s1654_s27 + $0x14] ss:$8 sps:$4 sm:$0xff]  }
  0x2f   : > { %1341 = vmatmul.mubr.bf16.gmra.mrb[4].mxu0 %v1403_v11  ;;  %v1421_v11 = vld [vmem:[%s1654_s27 + $0x10] ss:$8 sps:$4 sm:$0xff]  }
  0x30   : > { %1344 = vmatprep.mubr.bf16.mxu0 %v1404_v12  ;;  %v1422_v12 = vld [vmem:[%s1654_s27 + $0x24] ss:$8 sps:$4 sm:$0xff]  }
  0x37   : > { %1345 = vmatmul.mubr.bf16.gmra.mrb[8].mxu0 %v1405_v13  ;;  %v1424_v13 = vld [vmem:[%s1654_s27 + $0x20] ss:$8 sps:$4 sm:$0xff]  }
  0x38   : > { %1348 = vmatprep.mubr.bf16.mxu0 %v1406_v14  ;;  %v1425_v14 = vld [vmem:[%s1654_s27 + $0x34] ss:$8 sps:$4 sm:$0xff]  }
  0x3f   : > { %1349 = vmatmul.mubr.bf16.gmra.mrb[12].mxu0 %v1407_v15  ;;  %v1427_v15 = vld [vmem:[%s1654_s27 + $0x30] ss:$8 sps:$4 sm:$0xff]  }
  0x40   : > { %1352 = vmatprep.mubr.bf16.mxu0 %v1408_v16  ;;  %v1428_v16 = vld [vmem:[%s1654_s27 + $0x44] ss:$8 sps:$4 sm:$0xff]  }
  0x47   : > { %1353 = vmatmul.mubr.bf16.gmra.mrb[16].mxu0 %v1409_v17  ;;  %v1430_v17 = vld [vmem:[%s1654_s27 + $0x40] ss:$8 sps:$4 sm:$0xff]  }
  0x48   : > { %1356 = vmatprep.mubr.bf16.mxu0 %v1410_v18  ;;  %v1431_v18 = vld [vmem:[%s1654_s27 + $0x54] ss:$8 sps:$4 sm:$0xff]  }
  0x4f   : > { %1357 = vmatmul.mubr.bf16.gmra.mrb[20].mxu0 %v1411_v19  ;;  %v1433_v19 = vld [vmem:[%s1654_s27 + $0x50] ss:$8 sps:$4 sm:$0xff]  }
  0x50   : > { %1360 = vmatprep.mubr.bf16.mxu0 %v1412_v20  ;;  %v1434_v20 = vld [vmem:[%s1654_s27 + $0x64] ss:$8 sps:$4 sm:$0xff]  }
  0x57   : > { %1361 = vmatmul.mubr.bf16.gmra.mrb[24].mxu0 %v1413_v21  ;;  %v1436_v21 = vld [vmem:[%s1654_s27 + $0x60] ss:$8 sps:$4 sm:$0xff]  }
  0x58   : > { %1364 = vmatprep.mubr.bf16.mxu0 %v1414_v22  ;;  %v1437_v22 = vld [vmem:[%s1654_s27 + $0x74] ss:$8 sps:$4 sm:$0xff]  }
  0x5f   : > { %1365 = vmatmul.mubr.bf16.gmra.mrb[28].mxu0 %v1415_v23  ;;  %v1439_v23 = vld [vmem:[%s1654_s27 + $0x70] ss:$8 sps:$4 sm:$0xff]  }
  0xfa   : > { %v1338_v25 = vpop.f32.mrb[0].mxu0 }
  0xfb   : > { %v484_v26 = vpop.f32.mrb[1].mxu0 }
  0xfc   : > { %v1339_v27 = vpop.f32.mrb[2].mxu0 }
  0xfd   : > { %v644_v28 = vpack.c.bf16 %v1339_v27, %v1338_v25  ;;  %v487_v29 = vpop.f32.mrb[3].mxu0  ;;  %v1672_v25 = vand.u32 127, %v910_v24 }
  0xfe   : > { %v643_v30 = vpack.c.bf16 %v487_v29, %v484_v26 }
  0xff   : > { %vm912_vm0 = vcmp.lt.s32.totalorder %v1672_v25, 8 }
 0x102   : > { %v1342_v31 = vpop.f32.mrb[4].mxu0 }
 0x103   : > { %v500_v32 = vpop.f32.mrb[5].mxu0 }
 0x104   : > { %v1343_v33 = vpop.f32.mrb[6].mxu0 }
 0x105   : > { %v646_v34 = vpack.c.bf16 %v1343_v33, %v1342_v31  ;;  %v503_v35 = vpop.f32.mrb[7].mxu0 }
 0x106   : > { %v645_v36 = vpack.c.bf16 %v503_v35, %v500_v32 }
 0x10a   : > { %v1346_v37 = vpop.f32.mrb[8].mxu0 }
 0x10b   : > { %v516_v38 = vpop.f32.mrb[9].mxu0 }
 0x10c   : > { %v1347_v39 = vpop.f32.mrb[10].mxu0 }
 0x10d   : > { %v648_v40 = vpack.c.bf16 %v1347_v39, %v1346_v37  ;;  %v519_v41 = vpop.f32.mrb[11].mxu0 }
 0x10e   : > { %v647_v42 = vpack.c.bf16 %v519_v41, %v516_v38 }
 0x112   : > { %v1350_v43 = vpop.f32.mrb[12].mxu0 }
 0x113   : > { %v532_v44 = vpop.f32.mrb[13].mxu0 }
 0x114   : > { %v1351_v45 = vpop.f32.mrb[14].mxu0 }
 0x115   : > { %v650_v46 = vpack.c.bf16 %v1351_v45, %v1350_v43  ;;  %v535_v47 = vpop.f32.mrb[15].mxu0 }
 0x116   : > { %v649_v48 = vpack.c.bf16 %v535_v47, %v532_v44 }
 0x11a   : > { %v1354_v49 = vpop.f32.mrb[16].mxu0 }
 0x11b   : > { %v548_v50 = vpop.f32.mrb[17].mxu0 }
 0x11c   : > { %v1355_v51 = vpop.f32.mrb[18].mxu0 }
 0x11d   : > { %v652_v52 = vpack.c.bf16 %v1355_v51, %v1354_v49  ;;  %v551_v53 = vpop.f32.mrb[19].mxu0 }
 0x11e   : > { %v651_v54 = vpack.c.bf16 %v551_v53, %v548_v50 }
 0x120   : > { %1256 = vmatprep.subr.bf16.mxu1 %v651_v54 }
 0x121   : > { %1257 = vmatpush3.bf16.msra.mxu1 %v643_v30 }
 0x122   : > { %v1358_v55 = vpop.f32.mrb[20].mxu0  ;;  %1258 = vmatprep.subr.bf16.mxu1 %v652_v52 }
 0x123   : > { %v564_v56 = vpop.f32.mrb[21].mxu0 }
 0x124   : > { %v1359_v57 = vpop.f32.mrb[22].mxu0 }
 0x125   : > { %v654_v58 = vpack.c.bf16 %v1359_v57, %v1358_v55  ;;  %v567_v59 = vpop.f32.mrb[23].mxu0  ;;  %1259 = vmatpush3.bf16.msra.mxu1 %v644_v28  ;;  %v1677_v28 = vld [vmem:[%s1891_s3] ss:$0 sm:$0xff] }
 0x126   : > { %v653_v60 = vpack.c.bf16 %v567_v59, %v564_v56 }
 0x128   : > { %1260 = vmatprep.subr.bf16.mxu1 %v653_v60 }
 0x129   : > { %1261 = vmatpush3.bf16.msra.mxu1 %v645_v36 }
 0x12a   : > { %v1362_v61 = vpop.f32.mrb[24].mxu0  ;;  %1262 = vmatprep.subr.bf16.mxu1 %v654_v58 }
 0x12b   : > { %v580_v62 = vpop.f32.mrb[25].mxu0 }
 0x12c   : > { %v1363_v63 = vpop.f32.mrb[26].mxu0 }
 0x12d   : > { %v656_v0 = vpack.c.bf16 %v1363_v63, %v1362_v61  ;;  %v583_v1 = vpop.f32.mrb[27].mxu0  ;;  %1263 = vmatpush3.bf16.msra.mxu1 %v646_v34 }
 0x12e   : > { %v655_v2 = vpack.c.bf16 %v583_v1, %v580_v62 }
 0x130   : > { %1264 = vmatprep.subr.bf16.mxu1 %v655_v2 }
 0x131   : > { %1265 = vmatpush3.bf16.msra.mxu1 %v647_v42 }
 0x132   : > { %v1366_v3 = vpop.f32.mrb[28].mxu0  ;;  %1266 = vmatprep.subr.bf16.mxu1 %v656_v0 }
 0x133   : > { %v596_v4 = vpop.f32.mrb[29].mxu0 }
 0x134   : > { %v1367_v5 = vpop.f32.mrb[30].mxu0 }
 0x135   : > { %v658_v6 = vpack.c.bf16 %v1367_v5, %v1366_v3  ;;  %v599_v7 = vpop.f32.mrb[31].mxu0  ;;  %1267 = vmatpush3.bf16.msra.mxu1 %v648_v40 }
 0x136   : > { %v657_v8 = vpack.c.bf16 %v599_v7, %v596_v4 }
 0x138   : > { %1268 = vmatprep.subr.bf16.mxu1 %v657_v8 }
 0x139   : > { %1269 = vmatpush3.bf16.msra.mxu1 %v649_v48 }
 0x13a   : > { %1270 = vmatprep.subr.bf16.mxu1 %v658_v6 }
 0x13d   : > { %1271 = vmatpush3.bf16.msra.mxu1 %v650_v46 }
 0x140   : > { %772 = vmatmul.mubr.bf16.vlgmr.msra.gmra.mrb[0].mxu1 %v1416_v9 }
 0x141   : > { %779 = vmatprep.mubr.bf16.mxu1 %v1419_v10 }
 0x148   : > { %780 = vmatmul.mubr.bf16.gmra.mrb[4].mxu1 %v1421_v11 }
 0x149   : > { %787 = vmatprep.mubr.bf16.mxu1 %v1422_v12 }
 0x150   : > { %788 = vmatmul.mubr.bf16.gmra.mrb[8].mxu1 %v1424_v13 }
 0x151   : > { %795 = vmatprep.mubr.bf16.mxu1 %v1425_v14 }
 0x158   : > { %796 = vmatmul.mubr.bf16.gmra.mrb[12].mxu1 %v1427_v15 }
 0x159   : > { %803 = vmatprep.mubr.bf16.mxu1 %v1428_v16 }
 0x160   : > { %804 = vmatmul.mubr.bf16.gmra.mrb[16].mxu1 %v1430_v17 }
 0x161   : > { %811 = vmatprep.mubr.bf16.mxu1 %v1431_v18 }
 0x168   : > { %812 = vmatmul.mubr.bf16.gmra.mrb[20].mxu1 %v1433_v19 }
 0x169   : > { %819 = vmatprep.mubr.bf16.mxu1 %v1434_v20 }
 0x170   : > { %820 = vmatmul.mubr.bf16.gmra.mrb[24].mxu1 %v1436_v21 }
 0x171   : > { %827 = vmatprep.mubr.bf16.mxu1 %v1437_v22 }
 0x178   : > { %828 = vmatmul.mubr.bf16.gmra.mrb[28].mxu1 %v1439_v23 }
 0x213   : > { %v1272_v26 = vpop.f32.mrb[0].mxu1 }
 0x214   : > { %v1273_v27 = vpop.f32.mrb[1].mxu1 }
 0x215   : > { %v1274_v29 = vadd.f32 %v1273_v27, %v1272_v26  ;;  %v1275_v30 = vpop.f32.mrb[2].mxu1 }
 0x216   : > { %v1276_v31 = vpop.f32.mrb[3].mxu1 }
 0x217   : > { %v1277_v32 = vadd.f32 %v1276_v31, %v1275_v30  ;;  %v894_v33 = vadd.f32 %v1274_v29, %v1677_v28 }
 0x219   : > { %v1683_v34 = vsel %vm912_vm0, %v894_v33, -1e+30  ;;  %v895_v35 = vadd.f32 %v1277_v32, %v1677_v28 }
 0x21a   : > { %929 = vmax.xlane.f32.xlu0 %v1683_v34 }
 0x21b   : > { %v1278_v36 = vpop.f32.mrb[4].mxu1  ;;  %v1689_v40 = vsel %vm912_vm0, %v895_v35, -1e+30 }
 0x21c   : > { %v1279_v37 = vpop.f32.mrb[5].mxu1 }
 0x21d   : > { %v1280_v38 = vadd.f32 %v1279_v37, %v1278_v36  ;;  %v1281_v39 = vpop.f32.mrb[6].mxu1 }
 0x21e   : > { %v1282_v41 = vpop.f32.mrb[7].mxu1  ;;  %931 = vmax.xlane.f32.xlu0 %v1689_v40 }
 0x21f   : > { %v1283_v42 = vadd.f32 %v1282_v41, %v1281_v39  ;;  %v896_v43 = vadd.f32 %v1280_v38, %v1677_v28 }
 0x221   : > { %v1695_v44 = vsel %vm912_vm0, %v896_v43, -1e+30  ;;  %v897_v45 = vadd.f32 %v1283_v42, %v1677_v28 }
 0x222   : > { %933 = vmax.xlane.f32.xlu1 %v1695_v44 }
 0x223   : > { %v1284_v46 = vpop.f32.mrb[8].mxu1  ;;  %v1701_v50 = vsel %vm912_vm0, %v897_v45, -1e+30 }
 0x224   : > { %v1285_v47 = vpop.f32.mrb[9].mxu1 }
 0x225   : > { %v1286_v48 = vadd.f32 %v1285_v47, %v1284_v46  ;;  %v1287_v49 = vpop.f32.mrb[10].mxu1 }
 0x226   : > { %v1288_v51 = vpop.f32.mrb[11].mxu1  ;;  %935 = vmax.xlane.f32.xlu1 %v1701_v50 }
 0x227   : > { %v1289_v52 = vadd.f32 %v1288_v51, %v1287_v49  ;;  %v898_v53 = vadd.f32 %v1286_v48, %v1677_v28 }
 0x229   : > { %v1707_v54 = vsel %vm912_vm0, %v898_v53, -1e+30  ;;  %v899_v55 = vadd.f32 %v1289_v52, %v1677_v28 }
 0x22a   : > { %937 = vmax.xlane.f32.xlu0 %v1707_v54 }
 0x22b   : > { %v1290_v56 = vpop.f32.mrb[12].mxu1  ;;  %v1713_v57 = vsel %vm912_vm0, %v899_v55, -1e+30 }
 0x22c   : > { %v1291_v58 = vpop.f32.mrb[13].mxu1  ;;  %939 = vmax.xlane.f32.xlu1 %v1713_v57 }
 0x22d   : > { %v1292_v59 = vadd.f32 %v1291_v58, %v1290_v56  ;;  %v1293_v60 = vpop.f32.mrb[14].mxu1 }
 0x22e   : > { %v1294_v61 = vpop.f32.mrb[15].mxu1 }
 0x22f   : > { %v1295_v62 = vadd.f32 %v1294_v61, %v1293_v60  ;;  %v900_v63 = vadd.f32 %v1292_v59, %v1677_v28 }
 0x231   : > { %v1719_v0 = vsel %vm912_vm0, %v900_v63, -1e+30  ;;  %v901_v1 = vadd.f32 %v1295_v62, %v1677_v28 }
 0x232   : > { %941 = vmax.xlane.f32.xlu0 %v1719_v0 }
 0x233   : > { %v1296_v2 = vpop.f32.mrb[16].mxu1  ;;  %v1725_v3 = vsel %vm912_vm0, %v901_v1, -1e+30 }
 0x234   : > { %v1297_v4 = vpop.f32.mrb[17].mxu1  ;;  %943 = vmax.xlane.f32.xlu1 %v1725_v3 }
 0x235   : > { %v1298_v5 = vadd.f32 %v1297_v4, %v1296_v2  ;;  %v1299_v6 = vpop.f32.mrb[18].mxu1 }
 0x236   : > { %v1300_v7 = vpop.f32.mrb[19].mxu1 }
 0x237   : > { %v1301_v8 = vadd.f32 %v1300_v7, %v1299_v6  ;;  %v902_v9 = vadd.f32 %v1298_v5, %v1677_v28 }
 0x239   : > { %v1731_v10 = vsel %vm912_vm0, %v902_v9, -1e+30  ;;  %v903_v11 = vadd.f32 %v1301_v8, %v1677_v28 }
 0x23a   : > { %945 = vmax.xlane.f32.xlu0 %v1731_v10 }
 0x23b   : > { %v1302_v12 = vpop.f32.mrb[20].mxu1  ;;  %v1737_v13 = vsel %vm912_vm0, %v903_v11, -1e+30 }
 0x23c   : > { %v1303_v14 = vpop.f32.mrb[21].mxu1  ;;  %947 = vmax.xlane.f32.xlu1 %v1737_v13 }
 0x23d   : > { %v1304_v15 = vadd.f32 %v1303_v14, %v1302_v12  ;;  %v1305_v16 = vpop.f32.mrb[22].mxu1 }
 0x23e   : > { %v1306_v17 = vpop.f32.mrb[23].mxu1 }
 0x23f   : > { %v1307_v18 = vadd.f32 %v1306_v17, %v1305_v16  ;;  %v904_v19 = vadd.f32 %v1304_v15, %v1677_v28 }
 0x241   : > { %v1743_v20 = vsel %vm912_vm0, %v904_v19, -1e+30  ;;  %v905_v21 = vadd.f32 %v1307_v18, %v1677_v28 }
 0x242   : > { %949 = vmax.xlane.f32.xlu0 %v1743_v20 }
 0x243   : > { %v1308_v22 = vpop.f32.mrb[24].mxu1  ;;  %v1749_v23 = vsel %vm912_vm0, %v905_v21, -1e+30 }
 0x244   : > { %v1309_v24 = vpop.f32.mrb[25].mxu1  ;;  %951 = vmax.xlane.f32.xlu1 %v1749_v23 }
 0x245   : > { %v1310_v26 = vadd.f32 %v1309_v24, %v1308_v22  ;;  %v1311_v27 = vpop.f32.mrb[26].mxu1 }
 0x246   : > { %v1312_v29 = vpop.f32.mrb[27].mxu1 }
 0x247   : > { %v1313_v30 = vadd.f32 %v1312_v29, %v1311_v27  ;;  %v906_v31 = vadd.f32 %v1310_v26, %v1677_v28 }
 0x249   : > { %v1755_v32 = vsel %vm912_vm0, %v906_v31, -1e+30  ;;  %v907_v33 = vadd.f32 %v1313_v30, %v1677_v28 }
 0x24a   : > { %953 = vmax.xlane.f32.xlu0 %v1755_v32 }
 0x24b   : > { %v1314_v35 = vpop.f32.mrb[28].mxu1  ;;  %v1761_v36 = vsel %vm912_vm0, %v907_v33, -1e+30 }
 0x24c   : > { %v1315_v37 = vpop.f32.mrb[29].mxu1  ;;  %955 = vmax.xlane.f32.xlu1 %v1761_v36 }
 0x24d   : > { %v1316_v38 = vadd.f32 %v1315_v37, %v1314_v35  ;;  %v1317_v39 = vpop.f32.mrb[30].mxu1 }
 0x24e   : > { %v1318_v41 = vpop.f32.mrb[31].mxu1 }
 0x24f   : > { %v1319_v42 = vadd.f32 %v1318_v41, %v1317_v39  ;;  %v908_v43 = vadd.f32 %v1316_v38, %v1677_v28 }
 0x251   : > { %v1767_v45 = vsel %vm912_vm0, %v908_v43, -1e+30  ;;  %v909_v46 = vadd.f32 %v1319_v42, %v1677_v28 }
 0x252   : > { %957 = vmax.xlane.f32.xlu0 %v1767_v45 }
 0x253   : > { %v1773_v47 = vsel %vm912_vm0, %v909_v46, -1e+30 }
 0x254   : > { %959 = vmax.xlane.f32.xlu1 %v1773_v47 }
 0x2a7   : > { %v930_v48 = vpop.xlane.xlu0 %929 }
 0x2a8   : > { %v1777_v49 = vsub.f32 %v1683_v34, %v930_v48 }
 0x2aa   : > { %v977_v51 = vmul.f32 1.442695, %v1777_v49 }
 0x2ab   : > { %v932_v52 = vpop.xlane.xlu0 %931 }
 0x2ac   : > { %1440 = vpow2.f32 %v977_v51  ;;  %v1781_v53 = vsub.f32 %v1689_v40, %v932_v52 }
 0x2ae   : > { %v979_v28 = vmul.f32 1.442695, %v1781_v53 }
 0x2af   : > { %v934_v55 = vpop.xlane.xlu1 %933 }
 0x2b0   : > { %1442 = vpow2.f32 %v979_v28  ;;  %v1785_v25 = vsub.f32 %v1695_v44, %v934_v55 }
 0x2b2   : > { %v981_v56 = vmul.f32 1.442695, %v1785_v25 }
 0x2b3   : > { %v936_v58 = vpop.xlane.xlu1 %935 }
 0x2b4   : > { %1444 = vpow2.f32 %v981_v56  ;;  %v1789_v34 = vsub.f32 %v1701_v50, %v936_v58 }
 0x2b6   : > { %v1441_v59 = vpop.eup %1440  ;;  %v983_v60 = vmul.f32 1.442695, %v1789_v34 }
 0x2b7   : > { %1009 = vadd.xlane.f32.xlu0 %v1441_v59  ;;  %v938_v40 = vpop.xlane.xlu0 %937 }
 0x2b8   : > { %1446 = vpow2.f32 %v983_v60  ;;  %v1793_v61 = vsub.f32 %v1707_v54, %v938_v40 }
 0x2b9   : > { %v940_v62 = vpop.xlane.xlu1 %939 }
 0x2ba   : > { %v1443_v63 = vpop.eup %1442  ;;  %v985_v44 = vmul.f32 1.442695, %v1793_v61  ;;  %v1797_v1 = vsub.f32 %v1713_v57, %v940_v62 }
 0x2bb   : > { %1011 = vadd.xlane.f32.xlu1 %v1443_v63 }
 0x2bc   : > { %1448 = vpow2.f32 %v985_v44  ;;  %v987_v50 = vmul.f32 1.442695, %v1797_v1 }
 0x2be   : > { %v1445_v2 = vpop.eup %1444  ;;  %1450 = vpow2.f32 %v987_v50 }
 0x2bf   : > { %1013 = vadd.xlane.f32.xlu0 %v1445_v2  ;;  %v942_v4 = vpop.xlane.xlu0 %941 }
 0x2c0   : > { %v1801_v5 = vsub.f32 %v1719_v0, %v942_v4 }
 0x2c1   : > { %v944_v54 = vpop.xlane.xlu1 %943 }
 0x2c2   : > { %v1447_v6 = vpop.eup %1446  ;;  %v989_v7 = vmul.f32 1.442695, %v1801_v5  ;;  %v1805_v8 = vsub.f32 %v1725_v3, %v944_v54 }
 0x2c3   : > { %1015 = vadd.xlane.f32.xlu1 %v1447_v6 }
 0x2c4   : > { %1452 = vpow2.f32 %v989_v7  ;;  %v991_v57 = vmul.f32 1.442695, %v1805_v8 }
 0x2c6   : > { %v1449_v9 = vpop.eup %1448  ;;  %1454 = vpow2.f32 %v991_v57 }
 0x2c7   : > { %1017 = vadd.xlane.f32.xlu0 %v1449_v9  ;;  %v946_v11 = vpop.xlane.xlu0 %945 }
 0x2c8   : > { %v1451_v12 = vpop.eup %1450  ;;  %v1809_v14 = vsub.f32 %v1731_v10, %v946_v11 }
 0x2c9   : > { %v948_v0 = vpop.xlane.xlu1 %947  ;;  %1019 = vadd.xlane.f32.xlu1 %v1451_v12 }
 0x2ca   : > { %v993_v15 = vmul.f32 1.442695, %v1809_v14  ;;  %v1813_v16 = vsub.f32 %v1737_v13, %v948_v0 }
 0x2cc   : > { %1456 = vpow2.f32 %v993_v15  ;;  %v995_v3 = vmul.f32 1.442695, %v1813_v16 }
 0x2ce   : > { %v1453_v17 = vpop.eup %1452  ;;  %1458 = vpow2.f32 %v995_v3 }
 0x2cf   : > { %1021 = vadd.xlane.f32.xlu0 %v1453_v17  ;;  %v950_v18 = vpop.xlane.xlu0 %949 }
 0x2d0   : > { %v1455_v19 = vpop.eup %1454  ;;  %v1817_v21 = vsub.f32 %v1743_v20, %v950_v18 }
 0x2d1   : > { %v952_v10 = vpop.xlane.xlu1 %951  ;;  %1023 = vadd.xlane.f32.xlu1 %v1455_v19 }
 0x2d2   : > { %v997_v22 = vmul.f32 1.442695, %v1817_v21  ;;  %v1821_v24 = vsub.f32 %v1749_v23, %v952_v10 }
 0x2d4   : > { %1460 = vpow2.f32 %v997_v22  ;;  %v999_v13 = vmul.f32 1.442695, %v1821_v24 }
 0x2d6   : > { %v1457_v26 = vpop.eup %1456  ;;  %1462 = vpow2.f32 %v999_v13 }
 0x2d7   : > { %1025 = vadd.xlane.f32.xlu0 %v1457_v26  ;;  %v954_v27 = vpop.xlane.xlu0 %953 }
 0x2d8   : > { %v1459_v29 = vpop.eup %1458  ;;  %v1825_v30 = vsub.f32 %v1755_v32, %v954_v27 }
 0x2d9   : > { %v956_v20 = vpop.xlane.xlu1 %955  ;;  %1027 = vadd.xlane.f32.xlu1 %v1459_v29 }
 0x2da   : > { %v1001_v31 = vmul.f32 1.442695, %v1825_v30  ;;  %v1829_v33 = vsub.f32 %v1761_v36, %v956_v20 }
 0x2dc   : > { %1464 = vpow2.f32 %v1001_v31  ;;  %v1003_v23 = vmul.f32 1.442695, %v1829_v33 }
 0x2de   : > { %v1461_v35 = vpop.eup %1460  ;;  %1466 = vpow2.f32 %v1003_v23 }
 0x2df   : > { %1029 = vadd.xlane.f32.xlu0 %v1461_v35  ;;  %v958_v37 = vpop.xlane.xlu0 %957 }
 0x2e0   : > { %v1463_v38 = vpop.eup %1462  ;;  %v1833_v39 = vsub.f32 %v1767_v45, %v958_v37 }
 0x2e1   : > { %v960_v32 = vpop.xlane.xlu1 %959  ;;  %1031 = vadd.xlane.f32.xlu1 %v1463_v38 }
 0x2e2   : > { %v1005_v41 = vmul.f32 1.442695, %v1833_v39  ;;  %v1837_v42 = vsub.f32 %v1773_v47, %v960_v32 }
 0x2e4   : > { %1468 = vpow2.f32 %v1005_v41  ;;  %v1007_v36 = vmul.f32 1.442695, %v1837_v42 }
 0x2e6   : > { %v1465_v43 = vpop.eup %1464  ;;  %1470 = vpow2.f32 %v1007_v36 }
 0x2e7   : > { %1033 = vadd.xlane.f32.xlu0 %v1465_v43 }
 0x2e8   : > { %v1467_v46 = vpop.eup %1466 }
 0x2e9   : > { %1035 = vadd.xlane.f32.xlu1 %v1467_v46 }
 0x2ee   : > { %v1469_v48 = vpop.eup %1468 }
 0x2ef   : > { %1037 = vadd.xlane.f32.xlu0 %v1469_v48 }
 0x2f0   : > { %v1471_v45 = vpop.eup %1470 }
 0x2f1   : > { %1039 = vadd.xlane.f32.xlu1 %v1471_v45 }
 0x344   : > { %v1010_v51 = vpop.xlane.xlu0 %1009 }
 0x345   : > { %1472 = vlog2.f32 %v1010_v51 }
 0x348   : > { %v1012_v52 = vpop.xlane.xlu1 %1011 }
 0x349   : > { %1474 = vlog2.f32 %v1012_v52 }
 0x34c   : > { %v1014_v28 = vpop.xlane.xlu0 %1013 }
 0x34d   : > { %1476 = vlog2.f32 %v1014_v28 }
 0x34f   : > { %v1473_v47 = vpop.eup %1472 }
 0x350   : > { %v1042_v55 = vmul.f32 0.6931472, %v1473_v47  ;;  %v1016_v56 = vpop.xlane.xlu1 %1015 }
 0x351   : > { %1478 = vlog2.f32 %v1016_v56 }
 0x352   : > { %v1073_v58 = vsub.f32 %v1777_v49, %v1042_v55 }
 0x353   : > { %v1475_v59 = vpop.eup %1474 }
 0x354   : > { %1089 = vst [vmem:[%s1845_s5] sm:$0xff] %v1073_v58  ;;  %v1044_v60 = vmul.f32 0.6931472, %v1475_v59  ;;  %v1018_v40 = vpop.xlane.xlu0 %1017 }
 0x355   : > { %1480 = vlog2.f32 %v1018_v40 }
 0x356   : > { %v1074_v62 = vsub.f32 %v1781_v53, %v1044_v60  ;;  %v1020_v63 = vpop.xlane.xlu1 %1019 }
 0x357   : > { %v1477_v44 = vpop.eup %1476  ;;  %1482 = vlog2.f32 %v1020_v63 }
 0x358   : > { %1090 = vst [vmem:[%s1845_s5 + $0x8] sm:$0xff] %v1074_v62  ;;  %v1046_v50 = vmul.f32 0.6931472, %v1477_v44 }
 0x35a   : > { %v1075_v2 = vsub.f32 %v1785_v25, %v1046_v50 }
 0x35b   : > { %v1479_v4 = vpop.eup %1478 }
 0x35c   : > { %1091 = vst [vmem:[%s1845_s5 + $0x10] sm:$0xff] %v1075_v2  ;;  %v1048_v54 = vmul.f32 0.6931472, %v1479_v4  ;;  %v1022_v49 = vpop.xlane.xlu0 %1021 }
 0x35d   : > { %1484 = vlog2.f32 %v1022_v49 }
 0x35e   : > { %v1076_v6 = vsub.f32 %v1789_v34, %v1048_v54  ;;  %v1024_v7 = vpop.xlane.xlu1 %1023 }
 0x35f   : > { %v1481_v57 = vpop.eup %1480  ;;  %1486 = vlog2.f32 %v1024_v7 }
 0x360   : > { %1092 = vst [vmem:[%s1845_s5 + $0x18] sm:$0xff] %v1076_v6  ;;  %v1050_v53 = vmul.f32 0.6931472, %v1481_v57 }
 0x361   : > { %v1483_v9 = vpop.eup %1482 }
 0x362   : > { %v1077_v11 = vsub.f32 %v1793_v61, %v1050_v53  ;;  %v1052_v12 = vmul.f32 0.6931472, %v1483_v9 }
 0x364   : > { %1093 = vst [vmem:[%s1845_s5 + $0x20] sm:$0xff] %v1077_v11  ;;  %v1078_v25 = vsub.f32 %v1797_v1, %v1052_v12  ;;  %v1026_v0 = vpop.xlane.xlu0 %1025 }
 0x365   : > { %1488 = vlog2.f32 %v1026_v0 }
 0x366   : > { %1094 = vst [vmem:[%s1845_s5 + $0x28] sm:$0xff] %v1078_v25  ;;  %v1028_v15 = vpop.xlane.xlu1 %1027 }
 0x367   : > { %v1485_v3 = vpop.eup %1484  ;;  %1490 = vlog2.f32 %v1028_v15 }
 0x368   : > { %v1054_v34 = vmul.f32 0.6931472, %v1485_v3 }
 0x369   : > { %v1487_v17 = vpop.eup %1486 }
 0x36a   : > { %v1079_v18 = vsub.f32 %v1801_v5, %v1054_v34  ;;  %v1056_v19 = vmul.f32 0.6931472, %v1487_v17 }
 0x36c   : > { %1095 = vst [vmem:[%s1845_s5 + $0x30] sm:$0xff] %v1079_v18  ;;  %v1080_v61 = vsub.f32 %v1805_v8, %v1056_v19  ;;  %v1030_v10 = vpop.xlane.xlu0 %1029 }
 0x36d   : > { %1492 = vlog2.f32 %v1030_v10 }
 0x36e   : > { %1096 = vst [vmem:[%s1845_s5 + $0x38] sm:$0xff] %v1080_v61  ;;  %v1032_v1 = vpop.xlane.xlu1 %1031 }
 0x36f   : > { %v1489_v22 = vpop.eup %1488  ;;  %1494 = vlog2.f32 %v1032_v1 }
 0x370   : > { %v1058_v13 = vmul.f32 0.6931472, %v1489_v22 }
 0x371   : > { %v1491_v26 = vpop.eup %1490 }
 0x372   : > { %v1081_v27 = vsub.f32 %v1809_v14, %v1058_v13  ;;  %v1060_v29 = vmul.f32 0.6931472, %v1491_v26 }
 0x374   : > { %1097 = vst [vmem:[%s1845_s5 + $0x40] sm:$0xff] %v1081_v27  ;;  %v1082_v5 = vsub.f32 %v1813_v16, %v1060_v29  ;;  %v1034_v20 = vpop.xlane.xlu0 %1033 }
 0x375   : > { %1496 = vlog2.f32 %v1034_v20 }
 0x376   : > { %1098 = vst [vmem:[%s1845_s5 + $0x48] sm:$0xff] %v1082_v5  ;;  %v1036_v8 = vpop.xlane.xlu1 %1035 }
 0x377   : > { %v1493_v31 = vpop.eup %1492  ;;  %1498 = vlog2.f32 %v1036_v8 }
 0x378   : > { %v1062_v23 = vmul.f32 0.6931472, %v1493_v31 }
 0x379   : > { %v1495_v35 = vpop.eup %1494 }
 0x37a   : > { %v1083_v37 = vsub.f32 %v1817_v21, %v1062_v23  ;;  %v1064_v38 = vmul.f32 0.6931472, %v1495_v35 }
 0x37c   : > { %1099 = vst [vmem:[%s1845_s5 + $0x50] sm:$0xff] %v1083_v37  ;;  %v1084_v14 = vsub.f32 %v1821_v24, %v1064_v38  ;;  %v1038_v32 = vpop.xlane.xlu0 %1037 }
 0x37d   : > { %1500 = vlog2.f32 %v1038_v32 }
 0x37e   : > { %1100 = vst [vmem:[%s1845_s5 + $0x58] sm:$0xff] %v1084_v14  ;;  %v1040_v16 = vpop.xlane.xlu1 %1039 }
 0x37f   : > { %v1497_v41 = vpop.eup %1496  ;;  %1502 = vlog2.f32 %v1040_v16 }
 0x380   : > { %v1066_v36 = vmul.f32 0.6931472, %v1497_v41 }
 0x381   : > { %v1499_v43 = vpop.eup %1498 }
 0x382   : > { %v1085_v46 = vsub.f32 %v1825_v30, %v1066_v36  ;;  %v1068_v48 = vmul.f32 0.6931472, %v1499_v43 }
 0x384   : > { %1101 = vst [vmem:[%s1845_s5 + $0x60] sm:$0xff] %v1085_v46  ;;  %v1086_v21 = vsub.f32 %v1829_v33, %v1068_v48 }
 0x386   : > { %1102 = vst [vmem:[%s1845_s5 + $0x68] sm:$0xff] %v1086_v21 }
 0x387   : > { %v1501_v45 = vpop.eup %1500 }
 0x388   : > { %v1070_v51 = vmul.f32 0.6931472, %v1501_v45 }
 0x389   : > { %v1503_v24 = vpop.eup %1502 }
 0x38a   : > { %v1087_v52 = vsub.f32 %v1833_v39, %v1070_v51  ;;  %v1072_v28 = vmul.f32 0.6931472, %v1503_v24 }
 0x38c   : > { %1103 = vst [vmem:[%s1845_s5 + $0x70] sm:$0xff] %v1087_v52  ;;  %v1088_v47 = vsub.f32 %v1837_v42, %v1072_v28 }
 0x38e   : > { %1104 = vst [vmem:[%s1845_s5 + $0x78] sm:$0xff] %v1088_v47 }
 0x38f PF: > { %s14_s17 = sadd.s32 1, %s1526_s17   ;;  %s1893_s15 = smov %s1522_s16 }
 0x390   : > { %p11_p5 = scmp.ge.s32.totalorder %s14_s17, 4   ;;  %s1894_s16 = smov %s1896_s18 }
 0x392   :  { %13 = sbr.rel (!%p11_p5) target bundleno = 2 (0x2), region = 75 }

</bundles_post_ra>
